<compile_context>
chip_gen: v7x
topology: tpu7x:2x2x1
jax: 0.10.0
libtpu: 0.0.40
codegen_flags: <defaults>
</compile_context>

<pallas_src>
import functools

import jax
import jax.numpy as jnp
from jax.experimental import pallas as pl
from jax.experimental.pallas import tpu as pltpu


def _smooth_ce_kernel(x_ref, t_ref, o_ref, *, label_smoothing, vocab_size,
                      ignore_index, n_rows, block_rows, mask_rows):
    i = pl.program_id(0)

    x = x_ref[...]                          # (TN, V) in the input dtype (bf16 stays bf16)
    t = t_ref[...]                          # (TN, 1) int32

    valid = (t != ignore_index)             # (TN, 1)
    if mask_rows:
        # Last block may extend past N; those rows hold clipped-DMA garbage.
        # All reductions below are per-row, so it is enough to drop those rows
        # with the final select — no need to zero the (TN, V) tile.
        row = i * block_rows + jax.lax.broadcasted_iota(
            jnp.int32, (block_rows, 1), 0)
        valid = jnp.logical_and(valid, row < n_rows)

    # Numerically stable logsumexp over the vocab (lane) axis.
    # Elementwise ops stay in the input dtype; reductions accumulate in f32.
    m = jnp.max(x, axis=-1, keepdims=True)
    e = jnp.exp(x - m)
    denom = jnp.sum(e, axis=-1, keepdims=True, dtype=jnp.float32)
    lse = m.astype(jnp.float32) + jnp.log(denom)          # (TN, 1) f32

    # Smoothed CE, algebraic form:
    #   sum(q' * (x - lse)) = (1-ls)*(x_t - lse) + (ls/V)*(sum_x - V*lse)
    lane = jax.lax.broadcasted_iota(jnp.int32, x.shape, 1)
    x_t = jnp.sum(jnp.where(lane == t, x, jnp.zeros_like(x)),
                  axis=-1, keepdims=True, dtype=jnp.float32)
    sum_x = jnp.sum(x, axis=-1, keepdims=True, dtype=jnp.float32)

    c1 = 1.0 - label_smoothing
    c2 = label_smoothing / vocab_size
    ce = -(c1 * (x_t - lse) + c2 * (sum_x - float(vocab_size) * lse))
    # Select (not multiply): garbage/ignored rows (incl. NaN/inf) cannot leak.
    ce = jnp.where(valid, ce, 0.0)

    # One f32 partial per block, written lane-dense (lane 0 of this block's
    # 128-lane output segment, zeros elsewhere); wrapper sums the partials.
    s = jnp.sum(ce)
    lane0 = jax.lax.broadcasted_iota(jnp.int32, (1, 128), 1)
    o_ref[...] = jnp.where(lane0 == 0, s, 0.0)


def _vmem_params():
    """Generation-aware VMEM sizing (v7x has 64 MiB/TC, v5e/v6e have 128 MiB)."""
    try:
        cap = int(pltpu.get_tpu_info().vmem_capacity_bytes)
    except Exception:
        cap = 64 << 20                       # assume the smaller (v7x) size
    budget = (cap * 3) // 8                  # tile-sizing budget
    limit_cap = (cap * 5) // 8               # scoped-VMEM clamp (headroom for Mosaic scratch)
    return budget, limit_cap


def _pick_block_rows(n_rows, vocab_size, in_itemsize, comp_itemsize, *,
                     max_rows=1024, vmem_budget_bytes=24 << 20):
    # Budget ~= double-buffered input tile + ~4 full-tile compute-dtype temps.
    bytes_per_row = vocab_size * (2 * in_itemsize + 4 * comp_itemsize)
    br = max(8, vmem_budget_bytes // max(1, bytes_per_row))
    br = min(br, max_rows)
    br = min(br, ((n_rows + 7) // 8) * 8)    # no point exceeding (rounded) N
    return int(max(8, (br // 8) * 8))


def smooth_cross_entropy_loss(x, target, *, label_smoothing, vocab_size,
                              ignore_index=0, reduction='sum',
                              block_rows=None):
    """x: [..., V] float (f32 or bf16), target: [...] int. Returns scalar loss."""
    assert x.shape[-1] == vocab_size
    V = int(vocab_size)
    x2 = x.reshape(-1, V)
    if x2.dtype not in (jnp.dtype(jnp.bfloat16), jnp.dtype(jnp.float32)):
        x2 = x2.astype(jnp.float32)
    t2 = target.reshape(-1, 1).astype(jnp.int32)
    N = x2.shape[0]

    in_itemsize = x2.dtype.itemsize
    comp_itemsize = 2 if x2.dtype == jnp.dtype(jnp.bfloat16) else 4

    vmem_budget, vmem_limit_cap = _vmem_params()
    if block_rows is None:
        block_rows = _pick_block_rows(N, V, in_itemsize, comp_itemsize,
                                      vmem_budget_bytes=vmem_budget)
    block_rows = int(max(8, (int(block_rows) // 8) * 8))
    grid = pl.cdiv(N, block_rows)
    mask_rows = (N % block_rows) != 0

    kernel = functools.partial(
        _smooth_ce_kernel,
        label_smoothing=float(label_smoothing),
        vocab_size=V,
        ignore_index=int(ignore_index),
        n_rows=int(N),
        block_rows=block_rows,
        mask_rows=bool(mask_rows),
    )

    vmem_est = (2 * block_rows * V * in_itemsize
                + 4 * block_rows * V * comp_itemsize + (2 << 20))
    vmem_limit = int(min(max(vmem_est, 16 << 20), vmem_limit_cap))

    out = pl.pallas_call(
        kernel,
        out_shape=jax.ShapeDtypeStruct((1, grid * 128), jnp.float32),
        grid_spec=pltpu.PrefetchScalarGridSpec(
            num_scalar_prefetch=0,
            grid=(grid,),
            in_specs=[
                pl.BlockSpec((block_rows, V), lambda i: (i, 0)),
                pl.BlockSpec((block_rows, 1), lambda i: (i, 0)),
            ],
            # each grid step owns its own lane-dense 128-wide output segment
            out_specs=pl.BlockSpec((1, 128), lambda i: (0, i)),
        ),
        compiler_params=pltpu.CompilerParams(
            dimension_semantics=("parallel",),   # shardable across v7x's 2 TCs
            vmem_limit_bytes=vmem_limit),
    )(x2, t2)

    loss = jnp.sum(out)          # per-block partials (lane 0 of each segment), rest zeros
    if reduction == 'sum':
        return loss
    elif reduction == 'mean':
        # NOTE: like PyTorch, this is NaN/inf if every target == ignore_index.
        lengths = jnp.sum((target != ignore_index).astype(jnp.float32))
        return loss / lengths
    else:
        raise NotImplementedError(reduction)


def _reference(x, target, label_smoothing, vocab_size, ignore_index=0):
    x = x.astype(jnp.float32)
    mask = (target == ignore_index)[..., None]
    q = jax.nn.one_hot(target, vocab_size, dtype=jnp.float32)
    u = 1.0 / vocab_size
    q_prime = (1.0 - label_smoothing) * q + label_smoothing * u
    q_prime = jnp.where(mask, 0.0, q_prime)
    lse = jax.scipy.special.logsumexp(x, axis=-1, keepdims=True)
    ce = -jnp.sum(q_prime * (x - lse), axis=-1)
    return jnp.sum(ce)


if __name__ == "__main__":
    key = jax.random.PRNGKey(0)
    label_smoothing = 0.1
    ignore_index = 0

    # Case 1: f32, N divides the block evenly (single block).
    batch, seq, vocab = 2, 8, 32
    kx, kt, kx2, kt2, kx3, kt3 = jax.random.split(key, 6)
    x = jax.random.normal(kx, (batch, seq, vocab), dtype=jnp.float32)
    target = jax.random.randint(kt, (batch, seq), 0, vocab, dtype=jnp.int32)

    loss = smooth_cross_entropy_loss(
        x, target, label_smoothing=label_smoothing,
        vocab_size=vocab, ignore_index=ignore_index)
    loss = jax.block_until_ready(loss)
    ref = _reference(x, target, label_smoothing, vocab, ignore_index)
    assert jnp.allclose(loss, ref, rtol=1e-5, atol=1e-5), (loss, ref)

    # Case 2: f32, multiple blocks + partial last block + explicit ignore rows
    # (exercises the parallel partial-sum path and in-kernel row masking),
    # plus reduction='mean'.
    batch2, seq2 = 3, 7
    x_b = jax.random.normal(kx2, (batch2, seq2, vocab), dtype=jnp.float32)
    target_b = jax.random.randint(kt2, (batch2, seq2), 0, vocab, dtype=jnp.int32)
    target_b = target_b.at[0, 0].set(ignore_index).at[2, 3].set(ignore_index)

    loss_b = smooth_cross_entropy_loss(
        x_b, target_b, label_smoothing=label_smoothing,
        vocab_size=vocab, ignore_index=ignore_index, block_rows=8)
    loss_b = jax.block_until_ready(loss_b)
    ref_b = _reference(x_b, target_b, label_smoothing, vocab, ignore_index)
    assert jnp.allclose(loss_b, ref_b, rtol=1e-5, atol=1e-4), (loss_b, ref_b)

    loss_b_mean = smooth_cross_entropy_loss(
        x_b, target_b, label_smoothing=label_smoothing,
        vocab_size=vocab, ignore_index=ignore_index, reduction='mean',
        block_rows=8)
    loss_b_mean = jax.block_until_ready(loss_b_mean)
    cnt = jnp.sum((target_b != ignore_index).astype(jnp.float32))
    assert jnp.allclose(loss_b_mean, ref_b / cnt, rtol=1e-5, atol=1e-4), (
        loss_b_mean, ref_b / cnt)

    # Case 3: bf16 input (exercises the bf16-native elementwise path with f32
    # accumulation), multiple blocks.
    x_c = jax.random.normal(kx3, (batch, seq, vocab),
                            dtype=jnp.float32).astype(jnp.bfloat16)
    target_c = jax.random.randint(kt3, (batch, seq), 0, vocab, dtype=jnp.int32)
    loss_c = smooth_cross_entropy_loss(
        x_c, target_c, label_smoothing=label_smoothing,
        vocab_size=vocab, ignore_index=ignore_index, block_rows=8)
    loss_c = jax.block_until_ready(loss_c)
    ref_c = _reference(x_c, target_c, label_smoothing, vocab, ignore_index)
    assert jnp.allclose(loss_c, ref_c, rtol=2e-2, atol=0.1), (loss_c, ref_c)

    print("KERNEL_OK")
</pallas_src>

<mosaic_0001>
module attributes {stable_mosaic.version = 11 : i64} {
  func.func @_smooth_ce_kernel(%arg0: i32, %arg1: memref<16x32xf32, #tpu.memory_space<vmem>>, %arg2: memref<16x1xi32, #tpu.memory_space<vmem>>, %arg3: memref<1x128xf32, #tpu.memory_space<vmem>>) attributes {dimension_semantics = [#tpu.dimension_semantics<parallel>], iteration_bounds = array<i64: 1>, scalar_prefetch = 0 : i64, scratch_operands = 0 : i64, tpu.core_type = #tpu.core_type<tc>, window_params = [{transform_indices = @transform_0, window_bounds = array<i64: 16, 32>}, {transform_indices = @transform_1, window_bounds = array<i64: 16, 1>}, {transform_indices = @transform_2, window_bounds = array<i64: 1, 128>}]} {
    %c0 = arith.constant 0 : index
    %c0_0 = arith.constant 0 : index
    %0 = vector.load %arg1[%c0, %c0_0] : memref<16x32xf32, #tpu.memory_space<vmem>>, vector<16x32xf32>
    %c0_1 = arith.constant 0 : index
    %c0_2 = arith.constant 0 : index
    %1 = vector.load %arg2[%c0_1, %c0_2] : memref<16x1xi32, #tpu.memory_space<vmem>>, vector<16x1xi32>
    %c0_i32 = arith.constant 0 : i32
    %2 = vector.broadcast %c0_i32 : i32 to vector<16x1xi32>
    %3 = arith.cmpi ne, %1, %2 : vector<16x1xi32>
    %cst = arith.constant dense<0xFF800000> : vector<16xf32>
    %4 = vector.multi_reduction <maximumf>, %0, %cst [1] : vector<16x32xf32> to vector<16xf32>
    %5 = vector.shape_cast %4 : vector<16xf32> to vector<16x1xf32>
    %6 = vector.broadcast %5 : vector<16x1xf32> to vector<16x32xf32>
    %7 = arith.subf %0, %6 : vector<16x32xf32>
    %8 = math.exp %7 : vector<16x32xf32>
    %cst_3 = arith.constant dense<0.000000e+00> : vector<16xf32>
    %9 = vector.multi_reduction <add>, %8, %cst_3 [1] : vector<16x32xf32> to vector<16xf32>
    %10 = vector.shape_cast %9 : vector<16xf32> to vector<16x1xf32>
    %11 = math.log %10 : vector<16x1xf32>
    %12 = arith.addf %5, %11 : vector<16x1xf32>
    %13 = tpu.iota {dimensions = array<i32: 1>} : vector<16x32xi32>
    %14 = vector.broadcast %1 : vector<16x1xi32> to vector<16x32xi32>
    %15 = arith.cmpi eq, %13, %14 : vector<16x32xi32>
    %cst_4 = arith.constant 0.000000e+00 : f32
    %16 = vector.broadcast %cst_4 : f32 to vector<16x32xf32>
    %17 = arith.select %15, %0, %16 : vector<16x32xi1>, vector<16x32xf32>
    %cst_5 = arith.constant dense<0.000000e+00> : vector<16xf32>
    %18 = vector.multi_reduction <add>, %17, %cst_5 [1] : vector<16x32xf32> to vector<16xf32>
    %19 = vector.shape_cast %18 : vector<16xf32> to vector<16x1xf32>
    %cst_6 = arith.constant dense<0.000000e+00> : vector<16xf32>
    %20 = vector.multi_reduction <add>, %0, %cst_6 [1] : vector<16x32xf32> to vector<16xf32>
    %21 = vector.shape_cast %20 : vector<16xf32> to vector<16x1xf32>
    %22 = arith.subf %19, %12 : vector<16x1xf32>
    %cst_7 = arith.constant 0.899999976 : f32
    %23 = vector.broadcast %cst_7 : f32 to vector<16x1xf32>
    %24 = arith.mulf %23, %22 : vector<16x1xf32>
    %cst_8 = arith.constant 3.200000e+01 : f32
    %25 = vector.broadcast %cst_8 : f32 to vector<16x1xf32>
    %26 = arith.mulf %25, %12 : vector<16x1xf32>
    %27 = arith.subf %21, %26 : vector<16x1xf32>
    %cst_9 = arith.constant 3.125000e-03 : f32
    %28 = vector.broadcast %cst_9 : f32 to vector<16x1xf32>
    %29 = arith.mulf %28, %27 : vector<16x1xf32>
    %30 = arith.addf %24, %29 : vector<16x1xf32>
    %cst_10 = arith.constant 0.000000e+00 : f32
    %31 = vector.broadcast %cst_10 : f32 to vector<16x1xf32>
    %32 = arith.subf %31, %30 : vector<16x1xf32>
    %cst_11 = arith.constant 0.000000e+00 : f32
    %33 = vector.broadcast %cst_11 : f32 to vector<16x1xf32>
    %34 = arith.select %3, %32, %33 : vector<16x1xi1>, vector<16x1xf32>
    %35 = vector.shape_cast %34 : vector<16x1xf32> to vector<1x16x1xf32>
    %cst_12 = arith.constant dense<0.000000e+00> : vector<1xf32>
    %36 = vector.multi_reduction <add>, %35, %cst_12 [1, 2] : vector<1x16x1xf32> to vector<1xf32>
    %37 = vector.shape_cast %36 : vector<1xf32> to vector<1x1x1xf32>
    %38 = vector.extract %37[0, 0, 0] : f32 from vector<1x1x1xf32>
    %39 = tpu.iota {dimensions = array<i32: 1>} : vector<1x128xi32>
    %c0_i32_13 = arith.constant 0 : i32
    %40 = vector.broadcast %c0_i32_13 : i32 to vector<1x128xi32>
    %41 = arith.cmpi eq, %39, %40 : vector<1x128xi32>
    %cst_14 = arith.constant 0.000000e+00 : f32
    %42 = vector.broadcast %38 : f32 to vector<1x128xf32>
    %43 = vector.broadcast %cst_14 : f32 to vector<1x128xf32>
    %44 = arith.select %41, %42, %43 : vector<1x128xi1>, vector<1x128xf32>
    %c0_15 = arith.constant 0 : index
    %c0_16 = arith.constant 0 : index
    %45 = vector.load %arg3[%c0_15, %c0_16] : memref<1x128xf32, #tpu.memory_space<vmem>>, vector<1x128xf32>
    tpu.vector_store %arg3[%c0_15, %c0_16], %44 {strides = array<i32>} : memref<1x128xf32, #tpu.memory_space<vmem>>, vector<1x128xf32>,
    return
  }
  func.func @transform_0(%arg0: i32) -> (i32, i32) {
    %c0_i32 = arith.constant 0 : i32
    %c0_i32_0 = arith.constant 0 : i32
    return %arg0, %c0_i32 : i32, i32
  }
  func.func @transform_1(%arg0: i32) -> (i32, i32) {
    %c0_i32 = arith.constant 0 : i32
    %c0_i32_0 = arith.constant 0 : i32
    return %arg0, %c0_i32 : i32, i32
  }
  func.func @transform_2(%arg0: i32) -> (i32, i32) {
    %c0_i32 = arith.constant 0 : i32
    %c0_i32_0 = arith.constant 0 : i32
    return %c0_i32, %arg0 : i32, i32
  }
}

</mosaic_0001>

<bundles_post_ra>
// kernel: tpu_custom_call.1
= control target key start
LH: loop header
LB: loop body
LE: loop exit
PB: predicated region body
PF: predicated region fallthrough
CT: control target
= control target key end

     0   :  { %vm18_vm0 = vcmask 261120   ;;  %v152_v4 = vmov 0   ;;  %s214_s0 = inlined_call_operand.vmem [shape: f32[16,32], index: 0, kind: input, shape index: {}]   ;;  %s215_s1 = inlined_call_operand.vmem [shape: s32[16,1], index: 1, kind: input, shape index: {}]   ;;  %s216_s2 = inlined_call_operand.hbm [shape: f32[1,128], index: 2, kind: output, shape index: {}]  }
   0x1   :  { %v12_v0 = vld [vmem:[%s214_s0] sm:$0xff]  ;;  %v13_v1 = vld [vmem:[%s214_s0 + $0x8] sm:$0xff]  ;;  %118 = vset.pattern.permute.xlu1 %v152_v4  ;;  %119 = vset.pattern.permute.xlu0 %v152_v4 }
   0x2   :  { %v178_v2 = vld [vmem:[%s215_s1] sm:$0xff]  ;;  %v19_v3 = vsel %vm18_vm0, %v12_v0, -inf }
   0x3   :  { %7 = vsyncpa [#allocation3], 0  ;;  %20 = vmax.xlane.f32.xlu0 %v19_v3  ;;  %46 = vperm.xlu1 %118, %v178_v2   ;;  %v22_v5 = vsel %vm18_vm0, %v13_v1, -inf  ;;  %v186_v6 = vld [vmem:[%s215_s1 + $0x8] sm:$0xff]  ;;  %v43_v11 = vlaneseq  ;;  %v61_v25 = vsel %vm18_vm0, %v12_v0, 0.0  ;;  %v64_v26 = vsel %vm18_vm0, %v13_v1, 0.0 }
   0x4   :  { %vm16_vm3 = vcmp.ne.s32.totalorder %v178_v2, 0  ;;  %vm17_vm4 = vcmp.ne.s32.totalorder %v186_v6, 0  ;;  %vm83_vm5 = vcmask 7168   ;;  %s153_s0 = smov [#allocation2]  }
   0x5   :  { %v189_v15 = vand.u32 127, %v43_v11  ;;  %s106_s1 = sshll.u32 %s153_s0, 4  ;;  %s107_s1 = int_to_ptr.vmem [resolvable:$true] %s106_s1 }
   0x6   :  { %s128_s18 = scalar_lea.vmem %s107_s1, 16  ;;  %s132_s19 = scalar_lea.vmem %s107_s1, 32 }
   0x7   :  { %23 = vmax.xlane.f32.xlu0 %v22_v5  ;;  %49 = vperm.xlu1 %118, %v186_v6   ;;  %vm96_vm6 = vcmp.eq.s32.totalorder %v189_v15, 0  ;;  %p129_p0 = scmp.ne.s32.totalorder %s107_s1, %s128_s18  ;;  %p133_p1 = scmp.lt.s32.totalorder %s107_s1, %s107_s1 }
   0x8   :  { %p134_p2 = scmp.lt.s32.totalorder %s132_s19, %s128_s18 }
   0xa   :  { %p135_p3 = por %p134_p2, %p133_p1 }
   0xc   :  { %p136_p4 = pnand %p135_p3, %p129_p0 }
  0x82   :  { %v47_v14 = vpop.permute.xlu1 %46 }
  0x83   :  { %vm51_vm1 = vcmp.eq.s32.totalorder %v189_v15, %v47_v14 }
  0x84   :  { %v53_v18 = vsel %vm51_vm1, %v12_v0, 0.0 }
  0x85   :  { %v55_v20 = vsel %vm18_vm0, %v53_v18, 0.0 }
  0x86   :  { %v50_v16 = vpop.permute.xlu1 %49 }
  0x87   :  { %vm52_vm2 = vcmp.eq.s32.totalorder %v189_v15, %v50_v16 }
  0x88   :  { %v54_v22 = vsel %vm52_vm2, %v13_v1, 0.0 }
  0x89   :  { %v58_v24 = vsel %vm18_vm0, %v54_v22, 0.0 }
  0x90   :  { %v21_v7 = vpop.xlane.xlu0 %20 }
  0x91   :  { %v25_v8 = vsub.f32 %v12_v0, %v21_v7 }
  0x93   :  { %v27_v9 = vmul.f32 1.442695, %v25_v8 }
  0x94   :  { %v24_v10 = vpop.xlane.xlu0 %23 }
  0x95   :  { %120 = vpow2.f32 %v27_v9  ;;  %v26_v12 = vsub.f32 %v13_v1, %v24_v10 }
  0x97   :  { %v29_v13 = vmul.f32 1.442695, %v26_v12 }
  0x99   :  { %122 = vpow2.f32 %v29_v13 }
  0x9f   :  { %v121_v17 = vpop.eup %120 }
  0xa0   :  { %v31_v19 = vsel %vm18_vm0, %v121_v17, 0.0 }
  0xa1   :  { %32 = vadd.xlane.f32.xlu0 %v31_v19 }
  0xa3   :  { %v123_v21 = vpop.eup %122 }
  0xa4   :  { %v34_v23 = vsel %vm18_vm0, %v123_v21, 0.0 }
  0xa5   :  { %35 = vadd.xlane.f32.xlu1 %v34_v23  ;;  %56 = vadd.xlane.f32.xlu0 %v55_v20 }
  0xa9   :  { %59 = vadd.xlane.f32.xlu0 %v58_v24 }
  0xad   :  { %62 = vadd.xlane.f32.xlu0 %v61_v25 }
  0xb1   :  { %65 = vadd.xlane.f32.xlu0 %v64_v26 }
 0x12e   :  { %v33_v27 = vpop.xlane.xlu0 %32 }
 0x12f   :  { %124 = vlog2.f32 %v33_v27 }
 0x132   :  { %v36_v28 = vpop.xlane.xlu1 %35  ;;  %v57_v29 = vpop.xlane.xlu0 %56 }
 0x133   :  { %126 = vlog2.f32 %v36_v28 }
 0x136   :  { %v60_v30 = vpop.xlane.xlu0 %59 }
 0x139   :  { %v125_v31 = vpop.eup %124 }
 0x13a   :  { %v38_v32 = vmul.f32 0.6931472, %v125_v31  ;;  %v63_v33 = vpop.xlane.xlu0 %62 }
 0x13c   :  { %v41_v34 = vadd.f32 %v38_v32, %v21_v7 }
 0x13d   :  { %v127_v35 = vpop.eup %126 }
 0x13e   :  { %v40_v36 = vmul.f32 0.6931472, %v127_v35  ;;  %v67_v37 = vsub.f32 %v57_v29, %v41_v34  ;;  %v71_v38 = vmul.f32 32.0, %v41_v34  ;;  %v66_v41 = vpop.xlane.xlu0 %65 }
 0x140   :  { %v42_v39 = vadd.f32 %v40_v36, %v24_v10  ;;  %v73_v40 = vsub.f32 %v63_v33, %v71_v38  ;;  %v69_v42 = vmul.f32 0.9, %v67_v37 }
 0x142   :  { %v68_v43 = vsub.f32 %v60_v30, %v42_v39  ;;  %v75_v44 = vmul.f32 0.003125, %v73_v40  ;;  %v72_v45 = vmul.f32 32.0, %v42_v39 }
 0x144   :  { %v77_v46 = vadd.f32 %v75_v44, %v69_v42  ;;  %v74_v47 = vsub.f32 %v66_v41, %v72_v45  ;;  %v70_v48 = vmul.f32 0.9, %v68_v43 }
 0x146   :  { %v79_v49 = vsub.f32 0.0, %v77_v46  ;;  %v76_v50 = vmul.f32 0.003125, %v74_v47 }
 0x148   :  { %v78_v51 = vadd.f32 %v76_v50, %v70_v48  ;;  %v81_v53 = vsel %vm16_vm3, %v79_v49, 0.0 }
 0x149   :  { %v84_v55 = vsel %vm83_vm5, %v81_v53, 0.0 }
 0x14a   :  { %v80_v52 = vsub.f32 0.0, %v78_v51 }
 0x14c   :  { %v82_v54 = vsel %vm17_vm4, %v80_v52, 0.0 }
 0x14d   :  { %v85_v56 = vsel %vm83_vm5, %v82_v54, 0.0 }
 0x14e   :  { %v86_v57 = vadd.f32 %v85_v56, %v84_v55 }
 0x150   :  { %87 = vadd.xlane.f32.xlu0 %v86_v57 }
 0x1dd   :  { %v88_v58 = vpop.xlane.xlu0 %87 }
 0x1de   :  { %v89_v59 = vrot.slane %v88_v58, 4 }
 0x1e0   :  { %v90_v60 = vadd.f32 %v89_v59, %v88_v58 }
 0x1e2   :  { %v91_v61 = vrot.slane %v90_v60, 2 }
 0x1e4   :  { %v92_v62 = vadd.f32 %v91_v61, %v90_v60 }
 0x1e6   :  { %v93_v63 = vrot.slane %v92_v62, 1 }
 0x1e8   :  { %v94_v0 = vadd.f32 %v93_v63, %v92_v62 }
 0x1ea   :  { %114 = vpush %v94_v0 }
 0x21b   :  { %s115_s17 = spop %114 }
 0x21c   :  { %v97_v1 = vstv %s115_s17 }
 0x21d   :  { %v98_v2 = vsel %vm96_vm6, %v97_v1, 0.0 }
 0x21e   :  { %99 = vst [vmem:[#allocation2] sm:$0x1] %v98_v2 }
 0x21f   :  { %139 = shalt.err (!%p136_p4)
}
 0x220   :  { %s140_s22 = scalar_lea.hbm %s216_s2, 16 }
 0x221   :  { %p141_p5 = scmp.ne.s32.totalorder %s216_s2, %s140_s22  ;;  %p144_p6 = scmp.lt.u32.totalorder %s140_s22, %s216_s2 }
 0x223   :  { %p146_p7 = pnand %p144_p6, %p141_p5 }
 0x225   :  { %149 = shalt.err (!%p146_p7)
}
 0x226   :  { %109 = dma.vmem_to_hbm [thread:$0]  %s107_s1, 16, %s216_s2, [#allocation3]  }
 0x227   :  { %150 = dma.done.wait [#allocation3], 16  }
 0x228   :  { %151 = vsyncadd [#allocation3], 4294967280 }
 0x229   :  { %113 = vsyncpa [#allocation3], 1 }

</bundles_post_ra>
